<compile_context>
chip_gen: v6e
topology: v6e:2x2x1
jax: 0.10.0
libtpu: 0.0.40
codegen_flags: <defaults>
</compile_context>

<pallas_src>
import functools

import jax
import jax.numpy as jnp
from jax.experimental import pallas as pl
from jax.experimental.pallas import tpu as pltpu

EPS = 1e-6


def _round_up(x, m):
    return (x + m - 1) // m * m


def _cdiv(a, b):
    return (a + b - 1) // b


def _sublane(dtype):
    # Sublane packing: 8 rows for 32-bit, 16 for bf16/f16, 32 for int8/fp8.
    return max(8, 32 // jnp.dtype(dtype).itemsize)


def _vmem_capacity_bytes():
    try:
        return int(pltpu.get_tpu_info().vmem_capacity_bytes)
    except Exception:
        return 64 * 1024 * 1024   # conservative fallback (v7x per-TC VMEM)


# --------------------------------------------------------------------------- #
# Kernels
# --------------------------------------------------------------------------- #
def _add_layernorm(lang_ref, audio_ref, feat_dim, approx):
    """x = lang + audio; TRAR LayerNorm (unbiased std, eps added to std).

    gamma/beta are folded into the linear weight/bias, so only the
    normalization happens here.
    """
    x = lang_ref[...].astype(jnp.float32) + audio_ref[...].astype(jnp.float32)
    mean = jnp.mean(x, axis=-1, keepdims=True)
    xc = x - mean
    var_unb = jnp.sum(xc * xc, axis=-1, keepdims=True) * (1.0 / max(feat_dim - 1, 1))
    std = jnp.sqrt(var_unb)
    if approx:
        # EUP reciprocal (separate bundle slot) -> only a VPU multiply remains.
        return xc * pl.reciprocal(std + EPS, approx=True)
    return xc / (std + EPS)


def _cls_kernel(lang_ref, audio_ref, w_ref, b_ref, out_ref, *, feat_dim, approx):
    """n_o == 1: whole (folded) weight resident; fused add+LN+Linear."""
    xn = _add_layernorm(lang_ref, audio_ref, feat_dim, approx)
    out_ref[...] = (
        jnp.dot(xn.astype(w_ref.dtype), w_ref[...],
                preferred_element_type=jnp.float32)
        + b_ref[...].astype(jnp.float32)
    ).astype(out_ref.dtype)


def _cls_kernel_tiled_o(lang_ref, audio_ref, w_ref, b_ref, out_ref, y_ref,
                        *, feat_dim, approx):
    """n_o > 1: add+LN computed once per batch tile (j == 0), cached in VMEM."""
    @pl.when(pl.program_id(1) == 0)
    def _():
        y_ref[...] = _add_layernorm(lang_ref, audio_ref, feat_dim,
                                    approx).astype(y_ref.dtype)

    out_ref[...] = (
        jnp.dot(y_ref[...], w_ref[...], preferred_element_type=jnp.float32)
        + b_ref[...].astype(jnp.float32)
    ).astype(out_ref.dtype)


# --------------------------------------------------------------------------- #
# One-time parameter preparation (hoisted out of the hot path)
# --------------------------------------------------------------------------- #
def prepare_cls_params(params, *, weight_dtype=jnp.bfloat16):
    """Fold LN affine into the linear, transpose, pad O to 128, cast weight.

        y = gamma * xn + beta ;  out = y @ W^T + b
          = xn @ (gamma[:, None] * W^T) + (beta @ W^T + b)

    Call once per parameter set; the result is reusable across calls.
    """
    gamma = jnp.asarray(params["gamma"], jnp.float32)      # [D]
    beta = jnp.asarray(params["beta"], jnp.float32)        # [D]
    w = jnp.asarray(params["weight"], jnp.float32)         # [O, D] (PyTorch layout)
    b = jnp.asarray(params["bias"], jnp.float32)           # [O]
    out_dim, in_dim = w.shape

    w_t = w.T                                              # [D, O]
    w_fold = gamma[:, None] * w_t                          # [D, O]
    b_fold = beta @ w_t + b                                # [O]

    o_pad = _round_up(out_dim, 128)                        # lane-dense output
    if o_pad != out_dim:
        w_fold = jnp.pad(w_fold, ((0, 0), (0, o_pad - out_dim)))
        b_fold = jnp.pad(b_fold, ((0, o_pad - out_dim),))

    return {
        "w_t": w_fold.astype(weight_dtype),                # [D, O_pad]
        "bias": b_fold.reshape(1, o_pad),                  # [1, O_pad] f32
        "out_dim": out_dim,
        "in_dim": in_dim,
    }


# --------------------------------------------------------------------------- #
# Generation-aware tile selection
# --------------------------------------------------------------------------- #
def _select_tiles(B, D, O_pad, in_dtype, w_dtype, out_dtype):
    in_sz = jnp.dtype(in_dtype).itemsize
    w_sz = jnp.dtype(w_dtype).itemsize
    out_sz = jnp.dtype(out_dtype).itemsize
    sub = _sublane(in_dtype)

    vmem_cap = _vmem_capacity_bytes()
    budget = int(0.70 * vmem_cap)          # headroom for Mosaic internals

    # block_o: keep the whole folded weight resident unless VMEM forces tiling.
    block_o = O_pad
    while block_o > 128 and 2 * D * block_o * w_sz > budget // 2:
        block_o = _round_up(_cdiv(block_o, 2), 128)
    n_o = _cdiv(O_pad, block_o)

    # block_b: >= ~2 MiB per input DMA, capped by the VMEM budget and by B.
    target_rows = _cdiv(2 << 20, D * in_sz)
    fixed = 2 * (D * block_o * w_sz + block_o * 4)          # weight + bias (dbl-buf)
    per_row = (4 * D * in_sz                                 # 2 inputs, dbl-buf
               + 2 * block_o * out_sz                        # output tile, dbl-buf
               + (D * w_sz if n_o > 1 else 0))               # y scratch
    rows_cap = max(sub, (budget - fixed) // per_row)

    b_align = _round_up(B, sub)
    block_b = min(target_rows, rows_cap, b_align)
    # Keep >= 2 batch tiles when possible so the "parallel" batch axis can be
    # sharded across v7x's two TensorCores.
    if block_b >= b_align and b_align >= 2 * sub:
        block_b = _cdiv(b_align, 2)
    if block_b >= 128:
        block_b = _round_up(block_b, 128)
    else:
        block_b = _round_up(block_b, sub)
    return block_b, block_o, vmem_cap


# --------------------------------------------------------------------------- #
# Wrapper
# --------------------------------------------------------------------------- #
def cls_layer_text_audio(lang_feat, img_feat, audio_feat, params, *,
                         block_b=None, block_o=None,
                         weight_dtype=jnp.bfloat16, out_dtype=jnp.float32):
    """Pallas TPU implementation of cls_layer_text_audio.forward.

    lang_feat, audio_feat: [B, D] (any float dtype). img_feat is accepted but
    unused (matching the PyTorch module).  `params` is either the raw dict
    {gamma[D], beta[D], weight[O,D], bias[O]} or (preferably) the cached
    output of prepare_cls_params().
    """
    del img_feat  # unused in the reference forward

    if "w_t" not in params:
        # Slow path: per-call parameter prep. Prefer calling prepare_cls_params
        # once and passing the result.
        params = prepare_cls_params(params, weight_dtype=weight_dtype)
    w_t = params["w_t"]          # [D, O_pad], weight dtype
    bias = params["bias"]        # [1, O_pad], f32
    D, O_pad = w_t.shape
    O = params["out_dim"]

    B = lang_feat.shape[0]
    assert lang_feat.shape == (B, D) and audio_feat.shape == (B, D)

    auto_bb, auto_bo, vmem_cap = _select_tiles(
        B, D, O_pad, lang_feat.dtype, w_t.dtype, out_dtype)
    if block_b is None:
        block_b = auto_bb
    if block_o is None:
        block_o = auto_bo
    block_o = min(_round_up(block_o, 128), O_pad + 127)

    # Pad O further only in the rare case block_o does not divide O_pad.
    O_full = _round_up(O_pad, block_o)
    if O_full != O_pad:
        w_t = jnp.pad(w_t, ((0, 0), (0, O_full - O_pad)))
        bias = jnp.pad(bias, ((0, 0), (0, O_full - O_pad)))
    n_o = O_full // block_o

    # Batch padding: any B allowed; padded rows give xn == 0 (numerically safe).
    sub = _sublane(lang_feat.dtype)
    block_b = max(sub, _round_up(block_b, sub))
    B_full = _round_up(B, block_b)
    if B_full != B:
        lang_feat = jnp.pad(lang_feat, ((0, B_full - B), (0, 0)))
        audio_feat = jnp.pad(audio_feat, ((0, B_full - B), (0, 0)))
    n_b = B_full // block_b

    # Approx (EUP) reciprocal only on the low-precision weight path; the f32
    # validation path keeps the exact divide.
    approx = jnp.dtype(w_t.dtype) != jnp.dtype(jnp.float32)

    # Explicit VMEM budget from the actual double-buffered tile footprint.
    in_sz = jnp.dtype(lang_feat.dtype).itemsize
    w_sz = jnp.dtype(w_t.dtype).itemsize
    out_sz = jnp.dtype(out_dtype).itemsize
    est = (4 * block_b * D * in_sz                              # 2 inputs, dbl-buf
           + 2 * (D * block_o * w_sz + block_o * 4)             # weight + bias
           + 2 * block_b * block_o * out_sz                     # output tile
           + (block_b * D * w_sz if n_o > 1 else 0))            # y scratch
    vmem_limit = int(min(max(est * 3 // 2, 32 << 20), int(0.9 * vmem_cap)))

    in_specs = [
        pl.BlockSpec((block_b, D), lambda i, j: (i, 0)),        # lang tile
        pl.BlockSpec((block_b, D), lambda i, j: (i, 0)),        # audio tile
        pl.BlockSpec((D, block_o), lambda i, j: (0, j)),        # folded W^T tile
        pl.BlockSpec((1, block_o), lambda i, j: (0, j)),        # folded bias tile
    ]
    out_spec = pl.BlockSpec((block_b, block_o), lambda i, j: (i, j))

    if n_o == 1:
        kernel = functools.partial(_cls_kernel, feat_dim=D, approx=approx)
        scratch = []
        semantics = ("parallel", "parallel")
    else:
        kernel = functools.partial(_cls_kernel_tiled_o, feat_dim=D, approx=approx)
        scratch = [pltpu.VMEM((block_b, D), w_t.dtype)]         # cached post-LN y
        semantics = ("parallel", "arbitrary")                   # y carried across j

    out = pl.pallas_call(
        kernel,
        out_shape=jax.ShapeDtypeStruct((B_full, O_full), out_dtype),
        grid_spec=pltpu.PrefetchScalarGridSpec(
            num_scalar_prefetch=0,
            grid=(n_b, n_o),
            in_specs=in_specs,
            out_specs=out_spec,
            scratch_shapes=scratch,
        ),
        compiler_params=pltpu.CompilerParams(
            dimension_semantics=semantics,
            vmem_limit_bytes=vmem_limit),
    )(lang_feat, audio_feat, w_t, bias)

    return out[:B, :O]


# --------------------------------------------------------------------------- #
# Pure-JAX reference (matches the PyTorch module) + demo
# --------------------------------------------------------------------------- #
def _reference(lang_feat, audio_feat, params):
    x = lang_feat + audio_feat
    mean = jnp.mean(x, axis=-1, keepdims=True)
    std = jnp.sqrt(jnp.sum((x - mean) ** 2, axis=-1, keepdims=True)
                   / (x.shape[-1] - 1))
    y = params["gamma"] * (x - mean) / (std + EPS) + params["beta"]
    return y @ params["weight"].T + params["bias"]


if __name__ == "__main__":
    B, D, O = 256, 32, 16     # batch, input_dim, output_dim

    key = jax.random.PRNGKey(0)
    k_lang, k_img, k_audio, k_g, k_be, k_w, k_b = jax.random.split(key, 7)

    lang_feat = jax.random.normal(k_lang, (B, D), dtype=jnp.float32)
    img_feat = jax.random.normal(k_img, (B, D), dtype=jnp.float32)   # unused
    audio_feat = jax.random.normal(k_audio, (B, D), dtype=jnp.float32)

    # Deterministic synthetic parameters (shapes from __init__):
    #   LayerNorm(input_dim): gamma=[D], beta=[D]; Linear: weight=[O,D], bias=[O]
    # gamma/beta are non-trivial so the affine-fold path is actually exercised.
    params = {
        "gamma": 1.0 + 0.1 * jax.random.normal(k_g, (D,), dtype=jnp.float32),
        "beta": 0.1 * jax.random.normal(k_be, (D,), dtype=jnp.float32),
        "weight": 0.05 * jax.random.normal(k_w, (O, D), dtype=jnp.float32),
        "bias": 0.01 * jax.random.normal(k_b, (O,), dtype=jnp.float32),
    }

    ref = _reference(lang_feat, audio_feat, params)

    # One-time parameter prep (fold + transpose + pad + cast), hoisted out of
    # the per-call hot path.
    prep_f32 = prepare_cls_params(params, weight_dtype=jnp.float32)
    prep_bf16 = prepare_cls_params(params, weight_dtype=jnp.bfloat16)

    # Tight correctness check: f32 weights, exact reciprocal.
    out_f32 = cls_layer_text_audio(lang_feat, img_feat, audio_feat, prep_f32)
    out_f32 = jax.block_until_ready(out_f32)
    assert out_f32.shape == (B, O)
    assert jnp.max(jnp.abs(out_f32 - ref)) < 1e-4, "f32 mismatch vs reference"

    # Fast path: bf16 resident weight on the MXU, f32 accumulation,
    # EUP approx reciprocal in the LayerNorm.
    out = cls_layer_text_audio(lang_feat, img_feat, audio_feat, prep_bf16)
    out = jax.block_until_ready(out)
    assert out.shape == (B, O)
    assert jnp.max(jnp.abs(out - ref)) < 3e-2, "bf16 mismatch vs reference"

    print("KERNEL_OK")
</pallas_src>

<mosaic_0001>
module attributes {stable_mosaic.version = 11 : i64} {
  func.func @_cls_kernel(%arg0: i32, %arg1: i32, %arg2: memref<128x32xf32, #tpu.memory_space<vmem>>, %arg3: memref<128x32xf32, #tpu.memory_space<vmem>>, %arg4: memref<32x128xf32, #tpu.memory_space<vmem>>, %arg5: memref<1x128xf32, #tpu.memory_space<vmem>>, %arg6: memref<128x128xf32, #tpu.memory_space<vmem>>) attributes {dimension_semantics = [#tpu.dimension_semantics<parallel>, #tpu.dimension_semantics<parallel>], iteration_bounds = array<i64: 2, 1>, scalar_prefetch = 0 : i64, scratch_operands = 0 : i64, tpu.core_type = #tpu.core_type<tc>, window_params = [{transform_indices = @transform_0, window_bounds = array<i64: 128, 32>}, {transform_indices = @transform_1, window_bounds = array<i64: 128, 32>}, {transform_indices = @transform_2, window_bounds = array<i64: 32, 128>}, {transform_indices = @transform_3, window_bounds = array<i64: 1, 128>}, {transform_indices = @transform_4, window_bounds = array<i64: 128, 128>}]} {
    %c0 = arith.constant 0 : index
    %c0_0 = arith.constant 0 : index
    %0 = vector.load %arg2[%c0, %c0_0] : memref<128x32xf32, #tpu.memory_space<vmem>>, vector<128x32xf32>
    %c0_1 = arith.constant 0 : index
    %c0_2 = arith.constant 0 : index
    %1 = vector.load %arg3[%c0_1, %c0_2] : memref<128x32xf32, #tpu.memory_space<vmem>>, vector<128x32xf32>
    %2 = arith.addf %0, %1 : vector<128x32xf32>
    %cst = arith.constant dense<0.000000e+00> : vector<128xf32>
    %3 = vector.multi_reduction <add>, %2, %cst [1] : vector<128x32xf32> to vector<128xf32>
    %4 = vector.shape_cast %3 : vector<128xf32> to vector<128x1xf32>
    %cst_3 = arith.constant 3.200000e+01 : f32
    %5 = vector.broadcast %cst_3 : f32 to vector<128x1xf32>
    %6 = arith.divf %4, %5 : vector<128x1xf32>
    %7 = vector.broadcast %6 : vector<128x1xf32> to vector<128x32xf32>
    %8 = arith.subf %2, %7 : vector<128x32xf32>
    %9 = arith.mulf %8, %8 : vector<128x32xf32>
    %cst_4 = arith.constant dense<0.000000e+00> : vector<128xf32>
    %10 = vector.multi_reduction <add>, %9, %cst_4 [1] : vector<128x32xf32> to vector<128xf32>
    %11 = vector.shape_cast %10 : vector<128xf32> to vector<128x1xf32>
    %cst_5 = arith.constant 0.0322580636 : f32
    %12 = vector.broadcast %cst_5 : f32 to vector<128x1xf32>
    %13 = arith.mulf %11, %12 : vector<128x1xf32>
    %14 = math.sqrt %13 : vector<128x1xf32>
    %cst_6 = arith.constant 9.99999997E-7 : f32
    %15 = vector.broadcast %cst_6 : f32 to vector<128x1xf32>
    %16 = arith.addf %14, %15 : vector<128x1xf32>
    %17 = vector.broadcast %16 : vector<128x1xf32> to vector<128x32xf32>
    %18 = arith.divf %8, %17 : vector<128x32xf32>
    %c0_7 = arith.constant 0 : index
    %c0_8 = arith.constant 0 : index
    %19 = vector.load %arg4[%c0_7, %c0_8] : memref<32x128xf32, #tpu.memory_space<vmem>>, vector<32x128xf32>
    %cst_9 = arith.constant dense<0.000000e+00> : vector<128x128xf32>
    %20 = tpu.matmul %18, %19, %cst_9 {dimension_numbers = #tpu.dot_dimension_numbers<[1], [0], [0], [1], [0, 0, 1, 1], [], []>} : vector<128x32xf32>, vector<32x128xf32>, vector<128x128xf32> -> vector<128x128xf32>
    %c0_10 = arith.constant 0 : index
    %c0_11 = arith.constant 0 : index
    %21 = vector.load %arg5[%c0_10, %c0_11] : memref<1x128xf32, #tpu.memory_space<vmem>>, vector<1x128xf32>
    %22 = vector.broadcast %21 : vector<1x128xf32> to vector<128x128xf32>
    %23 = arith.addf %20, %22 : vector<128x128xf32>
    %c0_12 = arith.constant 0 : index
    %c0_13 = arith.constant 0 : index
    %24 = vector.load %arg6[%c0_12, %c0_13] : memref<128x128xf32, #tpu.memory_space<vmem>>, vector<128x128xf32>
    tpu.vector_store %arg6[%c0_12, %c0_13], %23 {strides = array<i32>} : memref<128x128xf32, #tpu.memory_space<vmem>>, vector<128x128xf32>,
    return
  }
  func.func @transform_0(%arg0: i32, %arg1: i32) -> (i32, i32) {
    %c0_i32 = arith.constant 0 : i32
    %c0_i32_0 = arith.constant 0 : i32
    return %arg0, %c0_i32 : i32, i32
  }
  func.func @transform_1(%arg0: i32, %arg1: i32) -> (i32, i32) {
    %c0_i32 = arith.constant 0 : i32
    %c0_i32_0 = arith.constant 0 : i32
    return %arg0, %c0_i32 : i32, i32
  }
  func.func @transform_2(%arg0: i32, %arg1: i32) -> (i32, i32) {
    %c0_i32 = arith.constant 0 : i32
    %c0_i32_0 = arith.constant 0 : i32
    return %c0_i32, %arg1 : i32, i32
  }
  func.func @transform_3(%arg0: i32, %arg1: i32) -> (i32, i32) {
    %c0_i32 = arith.constant 0 : i32
    %c0_i32_0 = arith.constant 0 : i32
    return %c0_i32, %arg1 : i32, i32
  }
  func.func @transform_4(%arg0: i32, %arg1: i32) -> (i32, i32) {
    %c0_i32 = arith.constant 0 : i32
    return %arg0, %arg1 : i32, i32
  }
}

</mosaic_0001>

<bundles_post_ra>
// kernel: tpu_custom_call.1
= control target key start
LH: loop header
LB: loop body
LE: loop exit
PB: predicated region body
PF: predicated region fallthrough
CT: control target
= control target key end

     0   :  { %9 = vsyncpa [#allocation3], 0  ;;  %s1846_s0 = inlined_call_operand.vmem [shape: f32[256,32], index: 0, kind: input, shape index: {}]   ;;  %s1847_s1 = inlined_call_operand.vmem [shape: f32[256,32], index: 1, kind: input, shape index: {}]   ;;  %s1848_s2 = inlined_call_operand.vmem [shape: f32[32,128], index: 2, kind: input, shape index: {}]   ;;  %s1849_s3 = inlined_call_operand.vmem [shape: f32[1,128], index: 3, kind: input, shape index: {}]   ;;  %s1850_s4 = inlined_call_operand.hbm [shape: f32[256,128], index: 4, kind: output, shape index: {}]  }
   0x1   :  { %11 = vsyncpa [#allocation3 + $0x1], 0  ;;  %s1304_s15 = smov 0   ;;  %s1306_s16 = smov 0  }
   0x2   :  { %s1308_s17 = smov 0   ;;  %s1310_s18 = smov 0  }
   0x3   :  { %s1312_s19 = smov 0   ;;  %s1314_s20 = smov 0  }
   0x4 LB: > { %s982_s21 = sadd.s32 4294967295, %s1274_s20   ;;  %s983_s22 = sadd.s32 4294967294, %s1274_s20   ;;  %s1274_s20 = sphi %s1314_s20, %s17_s20   ;;  %s1270_s19 = sphi %s1312_s19, %s1873_s19   ;;  %s1266_s18 = sphi %s1310_s18, %s1872_s18   ;;  %s1262_s17 = sphi %s1308_s17, %s1871_s17   ;;  %s1258_s16 = sphi %s1306_s16, %s1870_s16   ;;  %s1254_s15 = sphi %s1304_s15, %s1869_s15  }
   0x5   : > { %s29_s23 = sadd.s32 1, %s1270_s19  ;;  %s142_s24 = sadd.s32 1, %s1262_s17 }
   0x6   : > { %p31_p0 = scmp.ge.s32.totalorder %s29_s23, 2  ;;  %p152_p1 = scmp.ne.s32.totalorder %s1262_s17, %s1258_s16 }
   0x7   : > { %p153_p2 = scmp.eq.s32.totalorder %s982_s21, 1  ;;  %p158_p3 = scmp.ne.s32.totalorder %s1258_s16, %s1254_s15 }
   0x8   : > { %s1875_s23 = smov (%p31_p0, %s29_s23), 0  ;;  %p159_p5 = scmp.eq.s32.totalorder %s983_s22, 1 }
   0x9   : > { %p1344_p4 = por %p153_p2, %p152_p1  ;;  %s137_s26 = ssub.s32 %s1270_s19, %s1875_s23 }
   0xa   : > { %p988_p6 = scmp.ge.s32.totalorder %s1274_s20, 1  ;;  %p140_p7 = scmp.eq.s32.totalorder %s137_s26, 0 }
   0xb   : > { %p1351_p8 = por %p159_p5, %p158_p3  ;;  %p208_p9 = scmp.lt.s32.totalorder %s1274_s20, 3 }
   0xc   : > { %s1357_s28 = scalar_select %p140_p7, %s1262_s17, %s142_s24  }
   0xd   : > { %p209_p10 = pnand %p988_p6, %p208_p9 }
   0xe   : > { %s990_s29 = sshll.u32 (!%p209_p10), %s1266_s18, 4  ;;  %s1016_s8 = sshll.u32 (!%p209_p10), %s1266_s18, 11 }
   0xf   : > { %212 = sbr.rel (%p209_p10) target bundleno = 593 (0x251), region = 36  ;;  %p247_p11 = scmp.lt.s32.totalorder (!%p209_p10), %s990_s29, 31 }
  0x10   : > { %s1793_s12 = scalar_lea.hbm (!%p209_p10), %s1850_s4, %s1016_s8  ;;  %s1276_s14 = smov (!%p209_p10), [#allocation2]  }
  0x11   : > { %s1202_s21 = sshll.u32 (!%p209_p10), %s1276_s14, 4  ;;  %s1203_s21 = int_to_ptr.vmem [resolvable:$false] %s1202_s21 }
  0x12   : > { %s1204_s22 = scalar_lea.vmem (!%p209_p10), %s1203_s21, 4096 }
  0x14   : > { %s1877_s29 = smov (!%p247_p11, %s990_s29), 31  ;;  %vm1851_vm0 = vcmask 261120  }
  0x15   : > { %s991_s30 = sshll.u32 %s1877_s29, 3  ;;  %s243_s29 = sand.u32 1, %s1258_s16  }
  0x16   : > { %s1363_s7 = scalar_lea.vmem %s1846_s0, %s991_s30  ;;  %s1368_s10 = scalar_lea.vmem %s1847_s1, %s991_s30 }
  0x17   : > { %v266_v0 = vld [vmem:[%s1363_s7] sm:$0xff]  ;;  %v267_v2 = vld [vmem:[%s1363_s7 + $0x8] sm:$0xff]  ;;  %v268_v11 = vld [vmem:[%s1363_s7 + $0x10] sm:$0xff]  ;;  %s989_s30 = sshll.u32 %s243_s29, 7  ;;  %s1801_s18 = scalar_lea.sflag [#allocation3], %s243_s29 }
  0x18   : > { %v282_v1 = vld [vmem:[%s1368_s10] sm:$0xff]  ;;  %v283_v4 = vld [vmem:[%s1368_s10 + $0x8] sm:$0xff]  ;;  %v284_v14 = vld [vmem:[%s1368_s10 + $0x10] sm:$0xff] }
  0x19   : > { %v1373_v3 = vadd.f32 %v282_v1, %v266_v0  ;;  %v274_v5 = vld [vmem:[%s1363_s7 + $0x40] sm:$0xff]  ;;  %v1378_v7 = vadd.f32 %v283_v4, %v267_v2  ;;  %v275_v9 = vld [vmem:[%s1363_s7 + $0x48] sm:$0xff]  ;;  %v276_v15 = vld [vmem:[%s1363_s7 + $0x50] sm:$0xff]  ;;  %v1396_v19 = vadd.f32 %v284_v14, %v268_v11 }
  0x1a   : > { %v290_v6 = vld [vmem:[%s1368_s10 + $0x40] sm:$0xff]  ;;  %v291_v10 = vld [vmem:[%s1368_s10 + $0x48] sm:$0xff]  ;;  %v292_v16 = vld [vmem:[%s1368_s10 + $0x50] sm:$0xff] }
  0x1b   : > { %v1380_v8 = vadd.f32 %v290_v6, %v274_v5  ;;  %v315_v12 = vsel %vm1851_vm0, %v1373_v3, 0.0  ;;  %v1387_v13 = vadd.f32 %v291_v10, %v275_v9  ;;  %v318_v17 = vsel %vm1851_vm0, %v1378_v7, 0.0  ;;  %v269_v22 = vld [vmem:[%s1363_s7 + $0x18] sm:$0xff]  ;;  %v270_v30 = vld [vmem:[%s1363_s7 + $0x20] sm:$0xff]  ;;  %v271_v38 = vld [vmem:[%s1363_s7 + $0x28] sm:$0xff] }
  0x1c   : > { %316 = vadd.xlane.f32.xlu0 %v315_v12  ;;  %319 = vadd.xlane.f32.xlu1 %v318_v17  ;;  %v1400_v21 = vadd.f32 %v292_v16, %v276_v15  ;;  %v285_v23 = vld [vmem:[%s1368_s10 + $0x18] sm:$0xff]  ;;  %v321_v26 = vsel %vm1851_vm0, %v1396_v19, 0.0  ;;  %v286_v31 = vld [vmem:[%s1368_s10 + $0x20] sm:$0xff]  ;;  %v287_v39 = vld [vmem:[%s1368_s10 + $0x28] sm:$0xff] }
  0x1d   : > { %v339_v18 = vsel %vm1851_vm0, %v1380_v8, 0.0  ;;  %v342_v20 = vsel %vm1851_vm0, %v1387_v13, 0.0  ;;  %v277_v24 = vld [vmem:[%s1363_s7 + $0x58] sm:$0xff]  ;;  %v1408_v27 = vadd.f32 %v285_v23, %v269_v22  ;;  %v278_v32 = vld [vmem:[%s1363_s7 + $0x60] sm:$0xff]  ;;  %v1420_v35 = vadd.f32 %v286_v31, %v270_v30  ;;  %v279_v40 = vld [vmem:[%s1363_s7 + $0x68] sm:$0xff] }
  0x1e   : > { %v293_v25 = vld [vmem:[%s1368_s10 + $0x58] sm:$0xff]  ;;  %v345_v28 = vsel %vm1851_vm0, %v1400_v21, 0.0  ;;  %v294_v33 = vld [vmem:[%s1368_s10 + $0x60] sm:$0xff]  ;;  %v295_v41 = vld [vmem:[%s1368_s10 + $0x68] sm:$0xff]  ;;  %v1432_v43 = vadd.f32 %v287_v39, %v271_v38 }
  0x1f   : > { %v1412_v29 = vadd.f32 %v293_v25, %v277_v24  ;;  %v324_v34 = vsel %vm1851_vm0, %v1408_v27, 0.0  ;;  %v1424_v37 = vadd.f32 %v294_v33, %v278_v32  ;;  %v327_v42 = vsel %vm1851_vm0, %v1420_v35, 0.0  ;;  %v272_v46 = vld [vmem:[%s1363_s7 + $0x30] sm:$0xff]  ;;  %v273_v54 = vld [vmem:[%s1363_s7 + $0x38] sm:$0xff] }
  0x20   : > { %340 = vadd.xlane.f32.xlu0 %v339_v18  ;;  %343 = vadd.xlane.f32.xlu1 %v342_v20  ;;  %v1436_v45 = vadd.f32 %v295_v41, %v279_v40  ;;  %v288_v47 = vld [vmem:[%s1368_s10 + $0x30] sm:$0xff]  ;;  %v330_v50 = vsel %vm1851_vm0, %v1432_v43, 0.0  ;;  %v289_v55 = vld [vmem:[%s1368_s10 + $0x38] sm:$0xff] }
  0x21   : > { %v348_v36 = vsel %vm1851_vm0, %v1412_v29, 0.0  ;;  %v351_v44 = vsel %vm1851_vm0, %v1424_v37, 0.0  ;;  %v280_v48 = vld [vmem:[%s1363_s7 + $0x70] sm:$0xff]  ;;  %v1444_v51 = vadd.f32 %v288_v47, %v272_v46  ;;  %v281_v56 = vld [vmem:[%s1363_s7 + $0x78] sm:$0xff]  ;;  %v1456_v59 = vadd.f32 %v289_v55, %v273_v54  ;;  %s1772_s7 = scalar_lea.vmem [#allocation2], %s989_s30 }
  0x22   : > { %v296_v49 = vld [vmem:[%s1368_s10 + $0x70] sm:$0xff]  ;;  %v354_v52 = vsel %vm1851_vm0, %v1436_v45, 0.0  ;;  %v297_v57 = vld [vmem:[%s1368_s10 + $0x78] sm:$0xff]  ;;  %s871_s9 = sshll.u32 %s1772_s7, 4  ;;  %s1795_s9 = int_to_ptr.vmem [resolvable:$true] %s871_s9 }
  0x23   : > { %v1448_v53 = vadd.f32 %v296_v49, %v280_v48  ;;  %v333_v58 = vsel %vm1851_vm0, %v1444_v51, 0.0  ;;  %v1460_v61 = vadd.f32 %v297_v57, %v281_v56  ;;  %v336_v62 = vsel %vm1851_vm0, %v1456_v59, 0.0  ;;  %s1198_s13 = scalar_lea.vmem %s1795_s9, 2048  ;;  %p1205_p1 = scmp.lt.s32.totalorder %s1795_s9, %s1203_s21 }
  0x24   : > { %322 = vadd.xlane.f32.xlu0 %v321_v26  ;;  %346 = vadd.xlane.f32.xlu1 %v345_v28  ;;  %p1199_p12 = scmp.ne.s32.totalorder %s1795_s9, %s1198_s13  ;;  %p1206_p2 = scmp.lt.s32.totalorder %s1204_s22, %s1198_s13 }
  0x25   : > { %v357_v60 = vsel %vm1851_vm0, %v1448_v53, 0.0  ;;  %v360_v63 = vsel %vm1851_vm0, %v1460_v61, 0.0 }
  0x26   : > { %p1200_p13 = pnand %p1199_p12, %p1344_p4  ;;  %p1207_p3 = por %p1206_p2, %p1205_p1 }
  0x28   : > { %325 = vadd.xlane.f32.xlu0 %v324_v34  ;;  %349 = vadd.xlane.f32.xlu1 %v348_v36  ;;  %p1201_p0 = pneg %p1200_p13 }
  0x2a   : > { %p1208_p5 = pnand %p1207_p3, %p1201_p0 }
  0x2c   : > { %328 = vadd.xlane.f32.xlu0 %v327_v42  ;;  %352 = vadd.xlane.f32.xlu1 %v351_v44 }
  0x30   : > { %331 = vadd.xlane.f32.xlu0 %v330_v50  ;;  %355 = vadd.xlane.f32.xlu1 %v354_v52 }
  0x34   : > { %334 = vadd.xlane.f32.xlu0 %v333_v58  ;;  %358 = vadd.xlane.f32.xlu1 %v357_v60 }
  0x38   : > { %337 = vadd.xlane.f32.xlu0 %v336_v62  ;;  %361 = vadd.xlane.f32.xlu1 %v360_v63 }
  0xa5   : > { %v317_v0 = vpop.xlane.xlu0 %316  ;;  %v320_v2 = vpop.xlane.xlu1 %319 }
  0xa6   : > { %v364_v1 = vmul.f32 0.03125, %v317_v0  ;;  %v365_v4 = vmul.f32 0.03125, %v320_v2 }
  0xa8   : > { %v1467_v5 = vsub.f32 %v1373_v3, %v364_v1  ;;  %v1470_v6 = vsub.f32 %v1378_v7, %v365_v4 }
  0xa9   : > { %v341_v9 = vpop.xlane.xlu0 %340  ;;  %v344_v11 = vpop.xlane.xlu1 %343 }
  0xaa   : > { %v372_v10 = vmul.f32 0.03125, %v341_v9  ;;  %v396_v12 = vmul.f32 %v1467_v5, %v1467_v5  ;;  %v373_v14 = vmul.f32 0.03125, %v344_v11  ;;  %v397_v15 = vmul.f32 %v1470_v6, %v1470_v6 }
  0xac   : > { %v1477_v16 = vsub.f32 %v1380_v8, %v372_v10  ;;  %v412_v17 = vsel %vm1851_vm0, %v396_v12, 0.0  ;;  %v1481_v3 = vsub.f32 %v1387_v13, %v373_v14  ;;  %v415_v22 = vsel %vm1851_vm0, %v397_v15, 0.0 }
  0xad   : > { %413 = vadd.xlane.f32.xlu0 %v412_v17  ;;  %v323_v7 = vpop.xlane.xlu0 %322  ;;  %v347_v20 = vpop.xlane.xlu1 %346 }
  0xae   : > { %v366_v18 = vmul.f32 0.03125, %v323_v7  ;;  %v404_v23 = vmul.f32 %v1477_v16, %v1477_v16  ;;  %v374_v24 = vmul.f32 0.03125, %v347_v20  ;;  %v405_v25 = vmul.f32 %v1481_v3, %v1481_v3 }
  0xb0   : > { %v1489_v8 = vsub.f32 %v1396_v19, %v366_v18  ;;  %v436_v26 = vsel %vm1851_vm0, %v404_v23, 0.0  ;;  %v1493_v13 = vsub.f32 %v1400_v21, %v374_v24  ;;  %v439_v32 = vsel %vm1851_vm0, %v405_v25, 0.0  ;;  %v638_v25 = vld [vmem:[%s1848_s2 + $0x10] sm:$0xff] }
  0xb1   : > { %416 = vadd.xlane.f32.xlu0 %v415_v22  ;;  %437 = vadd.xlane.f32.xlu1 %v436_v26  ;;  %v326_v28 = vpop.xlane.xlu0 %325  ;;  %v350_v31 = vpop.xlane.xlu1 %349  ;;  %v637_v26 = vld [vmem:[%s1848_s2 + $0x8] sm:$0xff] }
  0xb2   : > { %v367_v30 = vmul.f32 0.03125, %v326_v28  ;;  %v398_v33 = vmul.f32 %v1489_v8, %v1489_v8  ;;  %v375_v34 = vmul.f32 0.03125, %v350_v31  ;;  %v406_v19 = vmul.f32 %v1493_v13, %v1493_v13  ;;  %v636_v28 = vld [vmem:[%s1848_s2] sm:$0xff] }
  0xb4   : > { %v1501_v36 = vsub.f32 %v1408_v27, %v367_v30  ;;  %v418_v21 = vsel %vm1851_vm0, %v398_v33, 0.0  ;;  %v1505_v38 = vsub.f32 %v1412_v29, %v375_v34  ;;  %v442_v42 = vsel %vm1851_vm0, %v406_v19, 0.0 }
  0xb5   : > { %440 = vadd.xlane.f32.xlu1 %v439_v32  ;;  %419 = vadd.xlane.f32.xlu0 %v418_v21  ;;  %v329_v39 = vpop.xlane.xlu0 %328  ;;  %v353_v41 = vpop.xlane.xlu1 %352 }
  0xb6   : > { %v368_v40 = vmul.f32 0.03125, %v329_v39  ;;  %v399_v44 = vmul.f32 %v1501_v36, %v1501_v36  ;;  %v376_v46 = vmul.f32 0.03125, %v353_v41  ;;  %v407_v27 = vmul.f32 %v1505_v38, %v1505_v38 }
  0xb8   : > { %v1513_v47 = vsub.f32 %v1420_v35, %v368_v40  ;;  %v421_v29 = vsel %vm1851_vm0, %v399_v44, 0.0  ;;  %v1517_v48 = vsub.f32 %v1424_v37, %v376_v46  ;;  %v445_v54 = vsel %vm1851_vm0, %v407_v27, 0.0 }
  0xb9   : > { %443 = vadd.xlane.f32.xlu1 %v442_v42  ;;  %422 = vadd.xlane.f32.xlu0 %v421_v29  ;;  %v332_v49 = vpop.xlane.xlu0 %331  ;;  %v356_v52 = vpop.xlane.xlu1 %355 }
  0xba   : > { %v369_v50 = vmul.f32 0.03125, %v332_v49  ;;  %v400_v55 = vmul.f32 %v1513_v47, %v1513_v47  ;;  %v377_v56 = vmul.f32 0.03125, %v356_v52  ;;  %v408_v35 = vmul.f32 %v1517_v48, %v1517_v48 }
  0xbc   : > { %v1525_v57 = vsub.f32 %v1432_v43, %v369_v50  ;;  %v424_v37 = vsel %vm1851_vm0, %v400_v55, 0.0  ;;  %v1529_v58 = vsub.f32 %v1436_v45, %v377_v56  ;;  %v448_v0 = vsel %vm1851_vm0, %v408_v35, 0.0 }
  0xbd   : > { %446 = vadd.xlane.f32.xlu1 %v445_v54  ;;  %425 = vadd.xlane.f32.xlu0 %v424_v37  ;;  %v335_v60 = vpop.xlane.xlu0 %334  ;;  %v359_v63 = vpop.xlane.xlu1 %358 }
  0xbe   : > { %v370_v62 = vmul.f32 0.03125, %v335_v60  ;;  %v401_v1 = vmul.f32 %v1525_v57, %v1525_v57  ;;  %v378_v2 = vmul.f32 0.03125, %v359_v63  ;;  %v409_v43 = vmul.f32 %v1529_v58, %v1529_v58 }
  0xc0   : > { %v1537_v4 = vsub.f32 %v1444_v51, %v370_v62  ;;  %v427_v45 = vsel %vm1851_vm0, %v401_v1, 0.0  ;;  %v1541_v9 = vsub.f32 %v1448_v53, %v378_v2  ;;  %v451_v14 = vsel %vm1851_vm0, %v409_v43, 0.0 }
  0xc1   : > { %449 = vadd.xlane.f32.xlu1 %v448_v0  ;;  %428 = vadd.xlane.f32.xlu0 %v427_v45  ;;  %v338_v10 = vpop.xlane.xlu0 %337  ;;  %v362_v12 = vpop.xlane.xlu1 %361 }
  0xc2   : > { %v371_v11 = vmul.f32 0.03125, %v338_v10  ;;  %v402_v15 = vmul.f32 %v1537_v4, %v1537_v4  ;;  %v379_v17 = vmul.f32 0.03125, %v362_v12  ;;  %v410_v51 = vmul.f32 %v1541_v9, %v1541_v9 }
  0xc4   : > { %v1549_v7 = vsub.f32 %v1456_v59, %v371_v11  ;;  %v430_v53 = vsel %vm1851_vm0, %v402_v15, 0.0  ;;  %v1553_v18 = vsub.f32 %v1460_v61, %v379_v17  ;;  %v454_v20 = vsel %vm1851_vm0, %v410_v51, 0.0  ;;  %v639_v61 = vld [vmem:[%s1848_s2 + $0x18] sm:$0xff] }
  0xc5   : > { %452 = vadd.xlane.f32.xlu1 %v451_v14  ;;  %431 = vadd.xlane.f32.xlu0 %v430_v53 }
  0xc6   : > { %v403_v22 = vmul.f32 %v1549_v7, %v1549_v7  ;;  %v411_v23 = vmul.f32 %v1553_v18, %v1553_v18  ;;  %1037 = vmatprep.subr.mxu0 %v639_v61  ;;  %1069 = vmatprep.subr.mxu1 %v639_v61 }
  0xc7   : > { %1038 = vmatpush3.msra.mxu0 %v639_v61  ;;  %1073 = vmatpush3.msra.mxu1 %v639_v61 }
  0xc8   : > { %v433_v24 = vsel %vm1851_vm0, %v403_v22, 0.0  ;;  %v457_v59 = vsel %vm1851_vm0, %v411_v23, 0.0  ;;  %1039 = vmatprep.subr.mxu0 %v638_v25  ;;  %1070 = vmatprep.subr.mxu1 %v638_v25 }
  0xc9   : > { %455 = vadd.xlane.f32.xlu1 %v454_v20  ;;  %434 = vadd.xlane.f32.xlu0 %v433_v24 }
  0xca   : > { %1040 = vmatpush3.msra.mxu0 %v638_v25  ;;  %1074 = vmatpush3.msra.mxu1 %v638_v25 }
  0xcb   : > { %1041 = vmatprep.subr.mxu0 %v637_v26  ;;  %1071 = vmatprep.subr.mxu1 %v637_v26 }
  0xcc   : > { %1042 = vmatpush3.msra.mxu0 %v637_v26  ;;  %1075 = vmatpush3.msra.mxu1 %v637_v26 }
  0xcd   : > { %458 = vadd.xlane.f32.xlu1 %v457_v59  ;;  %1043 = vmatprep.subr.mxu0 %v636_v28 }
  0xce   : > { %1072 = vmatprep.subr.mxu1 %v636_v28  ;;  %1044 = vmatpush3.msra.mxu0 %v636_v28 }
  0xcf   : > { %1076 = vmatpush3.msra.mxu1 %v636_v28 }
 0x136   : > { %v414_v30 = vpop.xlane.xlu0 %413 }
 0x137   : > { %v460_v31 = vmul.f32 0.032258064, %v414_v30 }
 0x139   : > { %1134 = vrsqrt.f32 %v460_v31  ;;  %vm478_vm1 = vcmp.eq.f32.partialorder %v460_v31, inf  ;;  %v481_v56 = vand.u32 2147483648, %v460_v31  ;;  %vm480_vm2 = vcmp.eq.f32.partialorder %v460_v31, 0.0 }
 0x13a   : > { %v438_v32 = vpop.xlane.xlu1 %437  ;;  %v417_v33 = vpop.xlane.xlu0 %416 }
 0x13b   : > { %v461_v34 = vmul.f32 0.032258064, %v417_v33  ;;  %v1574_v39 = vmul.f32 0.032258064, %v438_v32 }
 0x13d   : > { %1136 = vrsqrt.f32 %v461_v34  ;;  %v537_v35 = vand.u32 2147483648, %v1574_v39  ;;  %vm485_vm3 = vcmp.eq.f32.partialorder %v461_v34, inf  ;;  %vm487_vm4 = vcmp.eq.f32.partialorder %v461_v34, 0.0 }
 0x13e   : > { %v441_v19 = vpop.xlane.xlu1 %440  ;;  %v420_v21 = vpop.xlane.xlu0 %419  ;;  %v488_v43 = vand.u32 2147483648, %v461_v34  ;;  %vm534_vm10 = vcmp.eq.f32.partialorder %v1574_v39, inf }
 0x13f   : > { %v1576_v40 = vmul.f32 0.032258064, %v441_v19  ;;  %v1578_v41 = vmul.f32 0.032258064, %v420_v21 }
 0x141   : > { %1138 = vrsqrt.f32 %v1576_v40  ;;  %vm541_vm5 = vcmp.eq.f32.partialorder %v1576_v40, inf  ;;  %v544_v45 = vand.u32 2147483648, %v1576_v40  ;;  %vm492_vm6 = vcmp.eq.f32.partialorder %v1578_v41, inf }
 0x142   : > { %1140 = vrsqrt.f32 %v1578_v41  ;;  %v444_v42 = vpop.xlane.xlu1 %443  ;;  %v423_v44 = vpop.xlane.xlu0 %422  ;;  %vm494_vm7 = vcmp.eq.f32.partialorder %v1578_v41, 0.0  ;;  %vm543_vm8 = vcmp.eq.f32.partialorder %v1576_v40, 0.0  ;;  %v495_v12 = vand.u32 2147483648, %v1578_v41 }
 0x143   : > { %1142 = vrsqrt.f32 %v1574_v39  ;;  %v1583_v46 = vmul.f32 0.032258064, %v444_v42  ;;  %v1585_v27 = vmul.f32 0.032258064, %v423_v44 }
 0x145   : > { %1144 = vrsqrt.f32 %v1583_v46  ;;  %vm548_vm9 = vcmp.eq.f32.partialorder %v1583_v46, inf  ;;  %v551_v20 = vand.u32 2147483648, %v1583_v46  ;;  %vm499_vm11 = vcmp.eq.f32.partialorder %v1585_v27, inf }
 0x146   : > { %v1135_v29 = vpop.eup %1134  ;;  %1146 = vrsqrt.f32 %v1585_v27  ;;  %v447_v49 = vpop.xlane.xlu1 %446  ;;  %vm501_vm12 = vcmp.eq.f32.partialorder %v1585_v27, 0.0  ;;  %v502_v25 = vand.u32 2147483648, %v1585_v27  ;;  %vm550_vm14 = vcmp.eq.f32.partialorder %v1583_v46, 0.0 }
 0x147   : > { %v426_v50 = vpop.xlane.xlu0 %425  ;;  %v477_v52 = vmul.f32 %v1135_v29, %v460_v31  ;;  %v1589_v54 = vmul.f32 0.032258064, %v447_v49 }
 0x148   : > { %v1591_v55 = vmul.f32 0.032258064, %v426_v50 }
 0x149   : > { %1148 = vrsqrt.f32 %v1589_v54  ;;  %v479_v1 = vsel %vm478_vm1, %v460_v31, %v477_v52  ;;  %vm555_vm13 = vcmp.eq.f32.partialorder %v1589_v54, inf  ;;  %v558_v32 = vand.u32 2147483648, %v1589_v54 }
 0x14a   : > { %1150 = vrsqrt.f32 %v1591_v55  ;;  %v450_v37 = vpop.xlane.xlu1 %449  ;;  %v1137_v62 = vpop.eup %1136  ;;  %v482_v17 = vsel %vm480_vm2, %v481_v56, %v479_v1  ;;  %vm506_vm15 = vcmp.eq.f32.partialorder %v1591_v55, inf  ;;  %vm508_vm1 = vcmp.eq.f32.partialorder %v1591_v55, 0.0 }
 0x14b   : > { %v429_v60 = vpop.xlane.xlu0 %428  ;;  %v1596_v63 = vmul.f32 0.032258064, %v450_v37  ;;  %v484_v2 = vmul.f32 %v1137_v62, %v461_v34  ;;  %v588_v26 = vadd.f32 1e-06, %v482_v17  ;;  %v509_v42 = vand.u32 2147483648, %v1591_v55 }
 0x14c   : > { %v1598_v0 = vmul.f32 0.032258064, %v429_v60  ;;  %vm536_vm2 = vcmp.eq.f32.partialorder %v1574_v39, 0.0 }
 0x14d   : > { %1152 = vrsqrt.f32 %v1596_v63  ;;  %v486_v11 = vsel %vm485_vm3, %v461_v34, %v484_v2  ;;  %vm557_vm3 = vcmp.eq.f32.partialorder %v1589_v54, 0.0  ;;  %v565_v50 = vand.u32 2147483648, %v1596_v63 }
 0x14e   : > { %v1139_v10 = vpop.eup %1138  ;;  %1154 = vrsqrt.f32 %v1598_v0  ;;  %v453_v14 = vpop.xlane.xlu1 %452  ;;  %v489_v53 = vsel %vm487_vm4, %v488_v43, %v486_v11  ;;  %vm562_vm4 = vcmp.eq.f32.partialorder %v1596_v63, inf  ;;  %vm515_vm0 = vcmp.eq.f32.partialorder %v1598_v0, 0.0 }
 0x14f   : > { %v432_v15 = vpop.xlane.xlu0 %431  ;;  %v1141_v51 = vpop.eup %1140  ;;  %v1612_v22 = vmul.f32 0.032258064, %v453_v14  ;;  %v540_v24 = vmul.f32 %v1139_v10, %v1576_v40  ;;  %v589_v30 = vadd.f32 1e-06, %v489_v53  ;;  %v516_v62 = vand.u32 2147483648, %v1598_v0 }
 0x150   : > { %v1143_v23 = vpop.eup %1142  ;;  %v491_v59 = vmul.f32 %v1141_v51, %v1578_v41  ;;  %v1618_v61 = vmul.f32 0.032258064, %v432_v15 }
 0x151   : > { %1156 = vrsqrt.f32 %v1612_v22  ;;  %v533_v21 = vmul.f32 %v1143_v23, %v1574_v39  ;;  %v542_v44 = vsel %vm541_vm5, %v1576_v40, %v540_v24  ;;  %vm564_vm5 = vcmp.eq.f32.partialorder %v1596_v63, 0.0 }
 0x152   : > { %v1145_v28 = vpop.eup %1144  ;;  %v493_v31 = vsel %vm492_vm6, %v1578_v41, %v491_v59  ;;  %1158 = vrsqrt.f32 %v1618_v61  ;;  %v456_v33 = vpop.xlane.xlu1 %455  ;;  %vm513_vm6 = vcmp.eq.f32.partialorder %v1598_v0, inf  ;;  %v545_v41 = vsel %vm543_vm8, %v544_v45, %v542_v44 }
 0x153   : > { %v435_v34 = vpop.xlane.xlu0 %434  ;;  %v1147_v19 = vpop.eup %1146  ;;  %v547_v29 = vmul.f32 %v1145_v28, %v1583_v46  ;;  %v496_v52 = vsel %vm494_vm7, %v495_v12, %v493_v31  ;;  %v1645_v56 = vmul.f32 0.032258064, %v456_v33  ;;  %1160 = vrcp.f32 %v588_v26 }
 0x154   : > { %v498_v49 = vmul.f32 %v1147_v19, %v1585_v27  ;;  %v1647_v37 = vmul.f32 0.032258064, %v435_v34  ;;  %1162 = vrcp.f32 %v589_v30  ;;  %v590_v10 = vadd.f32 1e-06, %v496_v52 }
 0x155   : > { %1164 = vrsqrt.f32 %v1645_v56  ;;  %v549_v11 = vsel %vm548_vm9, %v1583_v46, %v547_v29  ;;  %vm569_vm7 = vcmp.eq.f32.partialorder %v1612_v22, inf  ;;  %vm571_vm8 = vcmp.eq.f32.partialorder %v1612_v22, 0.0 }
 0x156   : > { %v1149_v60 = vpop.eup %1148  ;;  %v500_v2 = vsel %vm499_vm11, %v1585_v27, %v498_v49  ;;  %v459_v14 = vpop.xlane.xlu1 %458  ;;  %v572_v40 = vand.u32 2147483648, %v1612_v22  ;;  %1166 = vrsqrt.f32 %v1647_v37  ;;  %v535_v45 = vsel %vm534_vm10, %v1574_v39, %v533_v21 }
 0x157   : > { %v1151_v1 = vpop.eup %1150  ;;  %v554_v43 = vmul.f32 %v1149_v60, %v1589_v54  ;;  %v597_v17 = vadd.f32 1e-06, %v545_v41  ;;  %v503_v51 = vsel %vm501_vm12, %v502_v25, %v500_v2  ;;  %v552_v59 = vsel %vm550_vm14, %v551_v20, %v549_v11 }
 0x158   : > { %v505_v12 = vmul.f32 %v1151_v1, %v1591_v55  ;;  %v1686_v25 = vmul.f32 0.032258064, %v459_v14  ;;  %vm520_vm9 = vcmp.eq.f32.partialorder %v1618_v61, inf  ;;  %v538_v30 = vsel %vm536_vm2, %v537_v35, %v535_v45 }
 0x159   : > { %v556_v53 = vsel %vm555_vm13, %v1589_v54, %v554_v43  ;;  %1168 = vrcp.f32 %v590_v10  ;;  %v591_v31 = vadd.f32 1e-06, %v503_v51  ;;  %v598_v33 = vadd.f32 1e-06, %v552_v59 }
 0x15a   : > { %v1153_v15 = vpop.eup %1152  ;;  %v507_v23 = vsel %vm506_vm15, %v1591_v55, %v505_v12  ;;  %v559_v46 = vsel %vm557_vm3, %v558_v32, %v556_v53  ;;  %1170 = vrsqrt.f32 %v1686_v25  ;;  %v596_v39 = vadd.f32 1e-06, %v538_v30 }
 0x15b   : > { %v1155_v24 = vpop.eup %1154  ;;  %v510_v26 = vsel %vm508_vm1, %v509_v42, %v507_v23  ;;  %v561_v27 = vmul.f32 %v1153_v15, %v1596_v63  ;;  %1172 = vrcp.f32 %v597_v17  ;;  %v599_v42 = vadd.f32 1e-06, %v559_v46 }
 0x15c   : > { %v512_v28 = vmul.f32 %v1155_v24, %v1598_v0  ;;  %v592_v34 = vadd.f32 1e-06, %v510_v26  ;;  %vm522_vm10 = vcmp.eq.f32.partialorder %v1618_v61, 0.0  ;;  %1174 = vrcp.f32 %v596_v39 }
 0x15d   : > { %v563_v55 = vsel %vm562_vm4, %v1596_v63, %v561_v27  ;;  %v523_v63 = vand.u32 2147483648, %v1618_v61  ;;  %1176 = vrcp.f32 %v591_v31  ;;  %vm576_vm11 = vcmp.eq.f32.partialorder %v1645_v56, inf }
 0x15e   : > { %v1157_v20 = vpop.eup %1156  ;;  %v514_v19 = vsel %vm513_vm6, %v1598_v0, %v512_v28  ;;  %v566_v21 = vsel %vm564_vm5, %v565_v50, %v563_v55  ;;  %1178 = vrcp.f32 %v598_v33  ;;  %vm578_vm13 = vcmp.eq.f32.partialorder %v1645_v56, 0.0 }
 0x15f   : > { %v1159_v35 = vpop.eup %1158  ;;  %v517_v54 = vsel %vm515_vm0, %v516_v62, %v514_v19  ;;  %v568_v32 = vmul.f32 %v1157_v20, %v1612_v22  ;;  %v600_v0 = vadd.f32 1e-06, %v566_v21  ;;  %1180 = vrcp.f32 %v592_v34 }
 0x160   : > { %v519_v44 = vmul.f32 %v1159_v35, %v1618_v61  ;;  %v593_v29 = vadd.f32 1e-06, %v517_v54  ;;  %v1161_v50 = vpop.eup %1160  ;;  %1182 = vrcp.f32 %v599_v42  ;;  %vm1854_vm0 = vcmask 261120  }
 0x161   : > { %v570_v49 = vsel %vm569_vm7, %v1612_v22, %v568_v32  ;;  %v1163_v62 = vpop.eup %1162  ;;  %v605_v41 = vmul.f32 %v1161_v50, %v1467_v5  ;;  %vm1855_vm12 = vmmov %vm1854_vm0  ;;  %vm527_vm14 = vcmp.eq.f32.partialorder %v1647_v37, inf  ;;  %vm529_vm15 = vcmp.eq.f32.partialorder %v1647_v37, 0.0 }
 0x162   : > { %v573_v52 = vsel %vm571_vm8, %v572_v40, %v570_v49  ;;  %v521_v60 = vsel %vm520_vm9, %v1618_v61, %v519_v44  ;;  %v1165_v2 = vpop.eup %1164  ;;  %v607_v11 = vmul.f32 %v1163_v62, %v1470_v6  ;;  %1184 = vrcp.f32 %v593_v29  ;;  %vm1856_vm2 = vmmov %vm1854_vm0 }
 0x163   : > { %v524_v1 = vsel %vm522_vm10, %v523_v63, %v521_v60  ;;  %v601_v43 = vadd.f32 1e-06, %v573_v52  ;;  %v575_v12 = vmul.f32 %v1165_v2, %v1645_v56  ;;  %1045 = vmatprep.mubr.msk.f32.mxu0 %vm1854_vm0, %v605_v41  ;;  %v1167_v22 = vpop.eup %1166  ;;  %v579_v61 = vand.u32 2147483648, %v1645_v56  ;;  %vm1857_vm4 = vmmov %vm1854_vm0 }
 0x164   : > { %v594_v10 = vadd.f32 1e-06, %v524_v1  ;;  %1046 = vmatmul.mubr.msk.f32.vlgmr.msra.gmra.mxu0 %vm1855_vm12, %v607_v11  ;;  %1186 = vrcp.f32 %v600_v0  ;;  %v526_v6 = vmul.f32 %v1167_v22, %v1647_v37  ;;  %v530_v40 = vand.u32 2147483648, %v1647_v37  ;;  %vm1858_vm5 = vmmov %vm1854_vm0 }
 0x165   : > { %v577_v5 = vsel %vm576_vm11, %v1645_v56, %v575_v12  ;;  %vm583_vm1 = vcmp.eq.f32.partialorder %v1686_v25, inf  ;;  %v586_v26 = vand.u32 2147483648, %v1686_v25  ;;  %vm585_vm3 = vcmp.eq.f32.partialorder %v1686_v25, 0.0  ;;  %vm1859_vm6 = vmmov %vm1854_vm0 }
 0x166   : > { %1188 = vrcp.f32 %v594_v10  ;;  %v580_v14 = vsel %vm578_vm13, %v579_v61, %v577_v5  ;;  %v1169_v45 = vpop.eup %1168  ;;  %v528_v17 = vsel %vm527_vm14, %v1647_v37, %v526_v6  ;;  %vm1860_vm7 = vmmov %vm1854_vm0 }
 0x167   : > { %1190 = vrcp.f32 %v601_v43  ;;  %v602_v15 = vadd.f32 1e-06, %v580_v14  ;;  %v1171_v51 = vpop.eup %1170  ;;  %v531_v53 = vsel %vm529_vm15, %v530_v40, %v528_v17  ;;  %v609_v23 = vmul.f32 %v1169_v45, %v1489_v8  ;;  %vm1861_vm8 = vmmov %vm1854_vm0 }
 0x168   : > { %v595_v56 = vadd.f32 1e-06, %v531_v53  ;;  %v582_v24 = vmul.f32 %v1171_v51, %v1686_v25  ;;  %v1173_v59 = vpop.eup %1172  ;;  %vm1862_vm9 = vmmov %vm1854_vm0 }
 0x169   : > { %1192 = vrcp.f32 %v602_v15  ;;  %1048 = vmatprep.mubr.msk.f32.mxu0 %vm1856_vm2, %v609_v23  ;;  %v1175_v27 = vpop.eup %1174  ;;  %v623_v37 = vmul.f32 %v1173_v59, %v1481_v3  ;;  %vm1863_vm10 = vmmov %vm1854_vm0 }
 0x16a   : > { %1194 = vrcp.f32 %v595_v56  ;;  %v584_v28 = vsel %vm583_vm1, %v1686_v25, %v582_v24  ;;  %v1177_v8 = vpop.eup %1176  ;;  %v621_v31 = vmul.f32 %v1175_v27, %v1477_v16  ;;  %vm1864_vm11 = vmmov %vm1854_vm0 }
 0x16b   : > { %v587_v30 = vsel %vm585_vm3, %v586_v26, %v584_v28  ;;  %v1179_v46 = vpop.eup %1178  ;;  %v611_v20 = vmul.f32 %v1177_v8, %v1501_v36  ;;  %vm1865_vm12 = vmmov %vm1854_vm0 }
 0x16c   : > { %v603_v55 = vadd.f32 1e-06, %v587_v30  ;;  %v1181_v33 = vpop.eup %1180  ;;  %1057 = vmatprep.mubr.msk.f32.mxu1 %vm1857_vm4, %v621_v31  ;;  %v625_v34 = vmul.f32 %v1179_v46, %v1493_v13  ;;  %vm1866_vm13 = vmmov %vm1854_vm0 }
 0x16d   : > { %v1183_v19 = vpop.eup %1182  ;;  %1058 = vmatmul.mubr.msk.f32.vlgmr.msra.gmra.mxu1 %vm1858_vm5, %v623_v37  ;;  %1049 = vmatmul.mubr.msk.f32.gmra.mxu0 %vm1859_vm6, %v611_v20  ;;  %v613_v3 = vmul.f32 %v1181_v33, %v1513_v47  ;;  %vm1867_vm14 = vmmov %vm1854_vm0 }
 0x16e   : > { %1196 = vrcp.f32 %v603_v55  ;;  %1060 = vmatprep.mubr.msk.f32.mxu1 %vm1860_vm7, %v625_v34  ;;  %v627_v16 = vmul.f32 %v1183_v19, %v1505_v38  ;;  %vm1868_vm15 = vmmov %vm1854_vm0 }
 0x16f   : > { %v1185_v25 = vpop.eup %1184  ;;  %1051 = vmatprep.mubr.msk.f32.mxu0 %vm1861_vm8, %v613_v3 }
 0x170   : > { %v615_v36 = vmul.f32 %v1185_v25, %v1525_v57 }
 0x171   : > { %v1187_v39 = vpop.eup %1186  ;;  %1061 = vmatmul.mubr.msk.f32.gmra.mxu1 %vm1862_vm9, %v627_v16 }
 0x172   : > { %v629_v13 = vmul.f32 %v1187_v39, %v1517_v48  ;;  %1052 = vmatmul.mubr.msk.f32.gmra.mxu0 %vm1863_vm10, %v615_v36 }
 0x173   : > { %v1189_v35 = vpop.eup %1188 }
 0x174   : > { %v1191_v21 = vpop.eup %1190  ;;  %v617_v47 = vmul.f32 %v1189_v35, %v1537_v4  ;;  %1063 = vmatprep.mubr.msk.f32.mxu1 %vm1854_vm0, %v629_v13 }
 0x175   : > { %v631_v38 = vmul.f32 %v1191_v21, %v1529_v58  ;;  %v994_v58 = vld [vmem:[%s1849_s3] ss:$0 sm:$0xff] }
 0x176   : > { %1054 = vmatprep.mubr.msk.f32.mxu0 %vm1864_vm11, %v617_v47  ;;  %v1193_v54 = vpop.eup %1192 }
 0x177   : > { %1064 = vmatmul.mubr.msk.f32.gmra.mxu1 %vm1865_vm12, %v631_v38  ;;  %v633_v48 = vmul.f32 %v1193_v54, %v1541_v9  ;;  %v1195_v57 = vpop.eup %1194 }
 0x178   : > { %v619_v32 = vmul.f32 %v1195_v57, %v1549_v7 }
 0x179   : > { %1066 = vmatprep.mubr.msk.f32.mxu1 %vm1866_vm13, %v633_v48 }
 0x17a   : > { %1055 = vmatmul.mubr.msk.f32.gmra.mxu0 %vm1867_vm14, %v619_v32 }
 0x17b   : > { %v1197_v42 = vpop.eup %1196 }
 0x17c   : > { %v635_v4 = vmul.f32 %v1197_v42, %v1553_v18 }
 0x17e   : > { %1067 = vmatmul.mubr.msk.f32.gmra.mxu1 %vm1868_vm15, %v635_v4 }
 0x224   : > { %v1047_v9 = vpop.f32.mrf.mxu0 }
 0x225   : > { %v767_v44 = vadd.f32 %v1047_v9, %v994_v58 }
 0x226   : > { %v761_v29 = vpop.f32.mrf.mxu0 }
 0x227   : > { %841 = vst [vmem:[%s1772_s7 + $0x8] sm:$0xff] %v767_v44  ;;  %v762_v7 = vadd.f32 %v994_v58, %v761_v29 }
 0x229   : > { %840 = vst [vmem:[%s1772_s7] sm:$0xff] %v762_v7 }
 0x22d   : > { %v1059_v18 = vpop.f32.mrf.mxu1  ;;  %v1050_v49 = vpop.f32.mrf.mxu0 }
 0x22e   : > { %v807_v63 = vadd.f32 %v1059_v18, %v994_v58  ;;  %v777_v50 = vadd.f32 %v1050_v49, %v994_v58 }
 0x22f   : > { %v801_v0 = vpop.f32.mrf.mxu1  ;;  %v771_v52 = vpop.f32.mrf.mxu0 }
 0x230   : > { %849 = vst [vmem:[%s1772_s7 + $0x48] sm:$0xff] %v807_v63  ;;  %v802_v60 = vadd.f32 %v994_v58, %v801_v0  ;;  %843 = vst [vmem:[%s1772_s7 + $0x18] sm:$0xff] %v777_v50  ;;  %v772_v62 = vadd.f32 %v994_v58, %v771_v52 }
 0x231   : > { %v1062_v1 = vpop.f32.mrf.mxu1 }
 0x232   : > { %v1053_v41 = vpop.f32.mrf.mxu0  ;;  %848 = vst [vmem:[%s1772_s7 + $0x40] sm:$0xff] %v802_v60  ;;  %842 = vst [vmem:[%s1772_s7 + $0x10] sm:$0xff] %v772_v62  ;;  %v817_v2 = vadd.f32 %v1062_v1, %v994_v58 }
 0x233   : > { %v787_v43 = vadd.f32 %v1053_v41, %v994_v58  ;;  %v811_v10 = vpop.f32.mrf.mxu1 }
 0x234   : > { %v781_v11 = vpop.f32.mrf.mxu0  ;;  %851 = vst [vmem:[%s1772_s7 + $0x58] sm:$0xff] %v817_v2  ;;  %v812_v12 = vadd.f32 %v994_v58, %v811_v10 }
 0x235   : > { %845 = vst [vmem:[%s1772_s7 + $0x28] sm:$0xff] %v787_v43  ;;  %v782_v22 = vadd.f32 %v994_v58, %v781_v11 }
 0x236   : > { %850 = vst [vmem:[%s1772_s7 + $0x50] sm:$0xff] %v812_v12 }
 0x237   : > { %v1065_v61 = vpop.f32.mrf.mxu1  ;;  %844 = vst [vmem:[%s1772_s7 + $0x20] sm:$0xff] %v782_v22 }
 0x238   : > { %v827_v5 = vadd.f32 %v1065_v61, %v994_v58 }
 0x239   : > { %v821_v6 = vpop.f32.mrf.mxu1 }
 0x23a   : > { %853 = vst [vmem:[%s1772_s7 + $0x68] sm:$0xff] %v827_v5  ;;  %v822_v14 = vadd.f32 %v994_v58, %v821_v6  ;;  %v1056_v40 = vpop.f32.mrf.mxu0 }
 0x23b   : > { %v797_v45 = vadd.f32 %v1056_v40, %v994_v58 }
 0x23c   : > { %852 = vst [vmem:[%s1772_s7 + $0x60] sm:$0xff] %v822_v14  ;;  %v791_v15 = vpop.f32.mrf.mxu0 }
 0x23d   : > { %847 = vst [vmem:[%s1772_s7 + $0x38] sm:$0xff] %v797_v45  ;;  %v792_v17 = vadd.f32 %v994_v58, %v791_v15 }
 0x23e   : > { %v1068_v51 = vpop.f32.mrf.mxu1 }
 0x23f   : > { %846 = vst [vmem:[%s1772_s7 + $0x30] sm:$0xff] %v792_v17  ;;  %v837_v53 = vadd.f32 %v1068_v51, %v994_v58 }
 0x240   : > { %v831_v23 = vpop.f32.mrf.mxu1 }
 0x241   : > { %855 = vst [vmem:[%s1772_s7 + $0x78] sm:$0xff] %v837_v53  ;;  %v832_v56 = vadd.f32 %v994_v58, %v831_v23 }
 0x243   : > { %854 = vst [vmem:[%s1772_s7 + $0x70] sm:$0xff] %v832_v56 }
 0x244   : > { %1211 = shalt.err (!%p1208_p5)
}
 0x245   : > { %s1212_s24 = scalar_lea.hbm %s1793_s12, 2048  ;;  %s1216_s30 = scalar_lea.hbm %s1850_s4, 4096 }
 0x246   : > { %p1213_p6 = scmp.ne.s32.totalorder %s1793_s12, %s1212_s24  ;;  %p1217_p10 = scmp.lt.s32.totalorder %s1793_s12, %s1850_s4 }
 0x247   : > { %p1218_p11 = scmp.lt.s32.totalorder %s1216_s30, %s1212_s24 }
 0x248   : > { %p1214_p7 = pnand %p1213_p6, %p1344_p4 }
 0x249   : > { %p1219_p12 = por %p1218_p11, %p1217_p10 }
 0x24a   : > { %p1215_p9 = pneg %p1214_p7 }
 0x24c   : > { %p1220_p13 = pnand %p1219_p12, %p1215_p9 }
 0x24e   : > { %1223 = shalt.err (!%p1220_p13)
}
 0x24f   : > { %s1277_s7 = smov 128   ;;  %s1278_s8 = smov 8  }
 0x250   : > { %1077 = dma.vmem_to_hbm [thread:$0]  (%p1344_p4), %s1795_s9, 2048, %s1793_s12, %s1801_s18, %s1277_s7, %s1277_s7, %s1278_s8  }
 0x251 PF: > { %p1083_p0 = scmp.ge.s32.totalorder %s1274_s20, 2  ;;  %s886_s10 = sand.u32 1, %s1254_s15  }
 0x252   : > { %s887_s11 = scalar_lea.sflag [#allocation3], %s886_s10 }
 0x253   : > { %p1080_p1 = pnand %p1083_p0, %p1351_p8 }
 0x255   : > { %p1081_p2 = pneg %p1080_p1 }
 0x257   : > { %1249 = dma.done.wait (%p1081_p2), %s887_s11, 2048  }
 0x258   : > { %1251 = vsyncadd (%p1081_p2), %s887_s11, 4294965248  ;;  %s17_s20 = sadd.s32 1, %s1274_s20   ;;  %s1869_s15 = smov %s1258_s16 }
 0x259   : > { %p14_p3 = scmp.ge.s32.totalorder %s17_s20, 4   ;;  %s1870_s16 = smov %s1262_s17 }
 0x25a   : > { %s1871_s17 = smov %s1357_s28  ;;  %s1872_s18 = smov %s1270_s19 }
 0x25b   : > { %s1873_s19 = smov %s1875_s23  ;;  %16 = sbr.rel (!%p14_p3) target bundleno = 4 (0x4), region = 80 }
 0x260   :  { %892 = vsyncpa [#allocation3], 1 }
 0x261   :  { %894 = vsyncpa [#allocation3 + $0x1], 1 }

</bundles_post_ra>
